<compile_context>
chip_gen: v6e
topology: v6e:2x2x1
jax: 0.10.0
libtpu: 0.0.40
codegen_flags: <defaults>
</compile_context>

<pallas_src>
import functools

import jax
import jax.numpy as jnp
from jax.experimental import pallas as pl
from jax.experimental.pallas import tpu as pltpu


_VMEM_SPEC = pl.BlockSpec(memory_space=pltpu.MemorySpace.VMEM)
_NEG = -1.0e30  # "-inf" for masked max pooling (empty graphs assumed impossible)


# ---------------- activation helpers (EUP-friendly) ----------------

def _gelu(x):
    # tanh-form GELU: tanh lands on the EUP slot instead of ~10 VALU ops + divide.
    c = 0.7978845608028654  # sqrt(2/pi)
    return 0.5 * x * (1.0 + jnp.tanh(c * (x + 0.044715 * x * x * x)))


def _elu(x):  # torch.nn.ELU() default alpha=1.0; clamp exp arg to avoid overflow work
    return jnp.where(x > 0, x, jnp.exp(jnp.minimum(x, 0.0)) - 1.0)


def _affine(x, w_ref, b_ref):
    # Linear with eval-mode BatchNorm already folded into (w, b).
    return jnp.dot(x, w_ref[...], preferred_element_type=jnp.float32) + b_ref[...]


# ---------------- fused whole-forward Pallas kernel ----------------

def _gnn_fused_kernel(x_ref, adj_ref, mask_ref, *rest, num_layers, eps):
    # rest = flat folded-weight refs (in layer order), then (out_ref, Z_ref, xout_ref)
    w_refs = rest[:-3]
    out_ref, Z_ref, xout_ref = rest[-3:]
    it = iter(w_refs)

    x = x_ref[...]                 # (N, F)      node features
    adj = adj_ref[...]             # (N, N)      dense adjacency, A[i, j] = #edges j->i
    mask3 = mask_ref[...]          # (B, N, T)   1.0 where node n belongs to graph b

    out_acc = None                 # (B, T) accumulator, VMEM-register resident
    Z_acc = None                   # (N, T) accumulator, VMEM-register resident

    for layer in range(num_layers):
        if layer == 0:
            w0, b0 = next(it), next(it)
            x = _gelu(_affine(x, w0, b0))                       # first_h: Lin+BN+GELU
        else:
            cw1, cb1, cw2, cb2 = next(it), next(it), next(it), next(it)
            # GINConv: (1+eps)*x_i + sum_{j in N(i)} x_j  == A @ x + (1+eps)*x
            h = jnp.dot(adj, x, preferred_element_type=jnp.float32) + (1.0 + eps) * x
            h = _elu(_affine(h, cw1, cb1))                      # Lin+BN+ELU
            x = _affine(h, cw2, cb2)                            # Lin+BN (no act)
        lw, lb = next(it), next(it)
        z = _elu(_affine(x, lw, lb))                            # classifier head
        Z_acc = z if Z_acc is None else Z_acc + z
        # per-graph max pool: one sublane-axis reduction, no per-row stores.
        pooled = jnp.max(jnp.where(mask3 > 0, z[None, :, :], _NEG), axis=1)
        out_acc = pooled if out_acc is None else out_acc + pooled   # dropout p=0 -> id

    out_ref[...] = out_acc.astype(out_ref.dtype)
    Z_ref[...] = Z_acc.astype(Z_ref.dtype)
    xout_ref[...] = x.astype(xout_ref.dtype)


def gnn_forward(params_flat, x, adj, mask3, *, num_layers, dim_target, dim_last, eps=0.0):
    n = x.shape[0]
    b = mask3.shape[0]
    kern = functools.partial(_gnn_fused_kernel, num_layers=num_layers, eps=eps)
    n_in = 3 + len(params_flat)
    return pl.pallas_call(
        kern,
        out_shape=(
            jax.ShapeDtypeStruct((b, dim_target), jnp.float32),   # out
            jax.ShapeDtypeStruct((n, dim_target), jnp.float32),   # Z
            jax.ShapeDtypeStruct((n, dim_last), jnp.float32),     # x (final layer)
        ),
        in_specs=[_VMEM_SPEC] * n_in,
        out_specs=(_VMEM_SPEC, _VMEM_SPEC, _VMEM_SPEC),
    )(x, adj, mask3, *params_flat)


# ---------------- deterministic parameter construction + BN folding ----------------

def _init_linear(key, din, dout):
    kw, kb = jax.random.split(key)
    return {
        "w": 0.1 * jax.random.normal(kw, (din, dout), jnp.float32),
        "b": 0.1 * jax.random.normal(kb, (dout,), jnp.float32),
    }


def _init_bn(key, dim):
    k1, k2, k3, k4 = jax.random.split(key, 4)
    gamma = 1.0 + 0.1 * jax.random.normal(k1, (dim,), jnp.float32)
    beta = 0.1 * jax.random.normal(k2, (dim,), jnp.float32)
    mean = 0.1 * jax.random.normal(k3, (dim,), jnp.float32)
    var = 1.0 + 0.1 * jax.random.uniform(k4, (dim,), jnp.float32)
    scale = gamma / jnp.sqrt(var + 1e-5)   # eval-mode BN folded to affine
    shift = beta - mean * scale
    return {"scale": scale, "shift": shift}


def _fold(lin, bn):
    # y = (x @ W + b) * scale + shift  ==  x @ (W*scale) + (b*scale + shift)
    w = lin["w"] * bn["scale"][None, :]
    b = lin["b"] * bn["scale"] + bn["shift"]
    return w, b.reshape(1, -1)


def init_gnn_params(key, dim_features, dim_target, layers=(16, 16, 8), featd=32):
    keys = iter(jax.random.split(key, 64))
    params = {"linears": [], "convs": []}
    for layer, out_dim in enumerate(layers):
        if layer == 0:
            params["first_h"] = {
                "lin": _init_linear(next(keys), dim_features, out_dim),
                "bn": _init_bn(next(keys), out_dim),
            }
        else:
            in_dim = layers[layer - 1]
            params["convs"].append({
                "lin1": _init_linear(next(keys), in_dim, featd),
                "bn1": _init_bn(next(keys), featd),
                "lin2": _init_linear(next(keys), featd, out_dim),
                "bn2": _init_bn(next(keys), out_dim),
            })
        params["linears"].append({
            "lin": _init_linear(next(keys), out_dim, dim_target),
            "bn": _init_bn(next(keys), dim_target),
        })
    return params


def fold_gnn_params(params, num_layers):
    """Flat, kernel-ordered list of BN-folded (w, b) arrays."""
    flat = []
    for layer in range(num_layers):
        if layer == 0:
            fh = params["first_h"]
            flat += list(_fold(fh["lin"], fh["bn"]))
        else:
            cv = params["convs"][layer - 1]
            flat += list(_fold(cv["lin1"], cv["bn1"]))
            flat += list(_fold(cv["lin2"], cv["bn2"]))
        ln = params["linears"][layer]
        flat += list(_fold(ln["lin"], ln["bn"]))
    return flat


# ---------------- pure-JAX reference (same math, sanity check) ----------------

def _reference_forward(flat, x, adj, mask3, num_layers, eps=0.0):
    it = iter(flat)
    out = None
    Z = None
    for layer in range(num_layers):
        if layer == 0:
            w, b = next(it), next(it)
            x = _gelu(x @ w + b)
        else:
            w1, b1, w2, b2 = next(it), next(it), next(it), next(it)
            h = adj @ x + (1.0 + eps) * x
            h = _elu(h @ w1 + b1)
            x = h @ w2 + b2
        lw, lb = next(it), next(it)
        z = _elu(x @ lw + lb)
        Z = z if Z is None else Z + z
        pooled = jnp.max(jnp.where(mask3 > 0, z[None, :, :], _NEG), axis=1)
        out = pooled if out is None else out + pooled
    return out, Z, x


if __name__ == "__main__":
    key = jax.random.PRNGKey(0)
    kx, ke1, ke2, kp = jax.random.split(key, 4)

    num_nodes, dim_features, dim_target = 24, 16, 8
    num_graphs, num_edges = 3, 48
    layers = (16, 16, 8)

    # node features [N, F]
    x = jax.random.normal(kx, (num_nodes, dim_features), jnp.float32)

    # edge_index -> dense adjacency A[i, j] = #edges j -> i (PyG source_to_target)
    src = jax.random.randint(ke1, (num_edges,), 0, num_nodes)
    dst = jax.random.randint(ke2, (num_edges,), 0, num_nodes)
    adj = jnp.zeros((num_nodes, num_nodes), jnp.float32).at[dst, src].add(1.0)

    # batch assignment -> graph-membership mask, pre-broadcast to (B, N, T) so the
    # kernel's pooling needs no transposes/relayouts.
    batch = jnp.repeat(jnp.arange(num_graphs), num_nodes // num_graphs)
    mask = (batch[None, :] == jnp.arange(num_graphs)[:, None]).astype(jnp.float32)
    mask3 = jnp.broadcast_to(mask[:, :, None], (num_graphs, num_nodes, dim_target)) * 1.0

    params = init_gnn_params(kp, dim_features, dim_target, layers)
    flat = fold_gnn_params(params, len(layers))

    fwd = jax.jit(functools.partial(
        gnn_forward, num_layers=len(layers), dim_target=dim_target, dim_last=layers[-1]))
    out, Z, x_final = fwd(flat, x, adj, mask3)
    jax.block_until_ready((out, Z, x_final))

    assert out.shape == (num_graphs, dim_target)
    assert Z.shape == (num_nodes, dim_target)
    assert x_final.shape == (num_nodes, layers[-1])
    assert bool(jnp.isfinite(out).all() & jnp.isfinite(Z).all() & jnp.isfinite(x_final).all())

    # sanity check against plain-XLA reference (loose tol: MXU f32 matmul passes)
    ro, rZ, rx = _reference_forward(flat, x, adj, mask3, len(layers))
    assert bool(jnp.allclose(out, ro, atol=2e-2, rtol=2e-2))
    assert bool(jnp.allclose(Z, rZ, atol=2e-2, rtol=2e-2))
    assert bool(jnp.allclose(x_final, rx, atol=2e-2, rtol=2e-2))

    print("KERNEL_OK")
</pallas_src>

<mosaic_0001>
module attributes {stable_mosaic.version = 11 : i64} {
  func.func @_gnn_fused_kernel(%arg0: memref<24x16xf32, #tpu.memory_space<vmem>>, %arg1: memref<24x24xf32, #tpu.memory_space<vmem>>, %arg2: memref<3x24x8xf32, #tpu.memory_space<vmem>>, %arg3: memref<16x16xf32, #tpu.memory_space<vmem>>, %arg4: memref<1x16xf32, #tpu.memory_space<vmem>>, %arg5: memref<16x8xf32, #tpu.memory_space<vmem>>, %arg6: memref<1x8xf32, #tpu.memory_space<vmem>>, %arg7: memref<16x32xf32, #tpu.memory_space<vmem>>, %arg8: memref<1x32xf32, #tpu.memory_space<vmem>>, %arg9: memref<32x16xf32, #tpu.memory_space<vmem>>, %arg10: memref<1x16xf32, #tpu.memory_space<vmem>>, %arg11: memref<16x8xf32, #tpu.memory_space<vmem>>, %arg12: memref<1x8xf32, #tpu.memory_space<vmem>>, %arg13: memref<16x32xf32, #tpu.memory_space<vmem>>, %arg14: memref<1x32xf32, #tpu.memory_space<vmem>>, %arg15: memref<32x8xf32, #tpu.memory_space<vmem>>, %arg16: memref<1x8xf32, #tpu.memory_space<vmem>>, %arg17: memref<8x8xf32, #tpu.memory_space<vmem>>, %arg18: memref<1x8xf32, #tpu.memory_space<vmem>>, %arg19: memref<3x8xf32, #tpu.memory_space<vmem>>, %arg20: memref<24x8xf32, #tpu.memory_space<vmem>>, %arg21: memref<24x8xf32, #tpu.memory_space<vmem>>) attributes {dimension_semantics = [], scalar_prefetch = 0 : i64, scratch_operands = 0 : i64, tpu.core_type = #tpu.core_type<tc>} {
    %c0 = arith.constant 0 : index
    %c0_0 = arith.constant 0 : index
    %0 = vector.load %arg0[%c0, %c0_0] : memref<24x16xf32, #tpu.memory_space<vmem>>, vector<24x16xf32>
    %c0_1 = arith.constant 0 : index
    %c0_2 = arith.constant 0 : index
    %1 = vector.load %arg1[%c0_1, %c0_2] : memref<24x24xf32, #tpu.memory_space<vmem>>, vector<24x24xf32>
    %c0_3 = arith.constant 0 : index
    %c0_4 = arith.constant 0 : index
    %c0_5 = arith.constant 0 : index
    %2 = vector.load %arg2[%c0_3, %c0_4, %c0_5] : memref<3x24x8xf32, #tpu.memory_space<vmem>>, vector<3x24x8xf32>
    %c0_6 = arith.constant 0 : index
    %c0_7 = arith.constant 0 : index
    %3 = vector.load %arg3[%c0_6, %c0_7] : memref<16x16xf32, #tpu.memory_space<vmem>>, vector<16x16xf32>
    %cst = arith.constant dense<0.000000e+00> : vector<24x16xf32>
    %4 = tpu.matmul %0, %3, %cst {dimension_numbers = #tpu.dot_dimension_numbers<[1], [0], [0], [1], [0, 0, 1, 1], [], []>} : vector<24x16xf32>, vector<16x16xf32>, vector<24x16xf32> -> vector<24x16xf32>
    %c0_8 = arith.constant 0 : index
    %c0_9 = arith.constant 0 : index
    %5 = vector.load %arg4[%c0_8, %c0_9] : memref<1x16xf32, #tpu.memory_space<vmem>>, vector<1x16xf32>
    %6 = vector.broadcast %5 : vector<1x16xf32> to vector<24x16xf32>
    %7 = arith.addf %4, %6 : vector<24x16xf32>
    %cst_10 = arith.constant 5.000000e-01 : f32
    %8 = vector.broadcast %cst_10 : f32 to vector<24x16xf32>
    %9 = arith.mulf %8, %7 : vector<24x16xf32>
    %cst_11 = arith.constant 4.471500e-02 : f32
    %10 = vector.broadcast %cst_11 : f32 to vector<24x16xf32>
    %11 = arith.mulf %10, %7 : vector<24x16xf32>
    %12 = arith.mulf %11, %7 : vector<24x16xf32>
    %13 = arith.mulf %12, %7 : vector<24x16xf32>
    %14 = arith.addf %7, %13 : vector<24x16xf32>
    %cst_12 = arith.constant 0.797884583 : f32
    %15 = vector.broadcast %cst_12 : f32 to vector<24x16xf32>
    %16 = arith.mulf %15, %14 : vector<24x16xf32>
    %17 = math.tanh %16 : vector<24x16xf32>
    %cst_13 = arith.constant 1.000000e+00 : f32
    %18 = vector.broadcast %cst_13 : f32 to vector<24x16xf32>
    %19 = arith.addf %18, %17 : vector<24x16xf32>
    %20 = arith.mulf %9, %19 : vector<24x16xf32>
    %c0_14 = arith.constant 0 : index
    %c0_15 = arith.constant 0 : index
    %21 = vector.load %arg5[%c0_14, %c0_15] : memref<16x8xf32, #tpu.memory_space<vmem>>, vector<16x8xf32>
    %cst_16 = arith.constant dense<0.000000e+00> : vector<24x8xf32>
    %22 = tpu.matmul %20, %21, %cst_16 {dimension_numbers = #tpu.dot_dimension_numbers<[1], [0], [0], [1], [0, 0, 1, 1], [], []>} : vector<24x16xf32>, vector<16x8xf32>, vector<24x8xf32> -> vector<24x8xf32>
    %c0_17 = arith.constant 0 : index
    %c0_18 = arith.constant 0 : index
    %23 = vector.load %arg6[%c0_17, %c0_18] : memref<1x8xf32, #tpu.memory_space<vmem>>, vector<1x8xf32>
    %24 = vector.broadcast %23 : vector<1x8xf32> to vector<24x8xf32>
    %25 = arith.addf %22, %24 : vector<24x8xf32>
    %cst_19 = arith.constant 0.000000e+00 : f32
    %26 = vector.broadcast %cst_19 : f32 to vector<24x8xf32>
    %27 = arith.cmpf ogt, %25, %26 : vector<24x8xf32>
    %cst_20 = arith.constant 0.000000e+00 : f32
    %28 = vector.broadcast %cst_20 : f32 to vector<24x8xf32>
    %29 = arith.minimumf %25, %28 : vector<24x8xf32>
    %30 = math.exp %29 : vector<24x8xf32>
    %cst_21 = arith.constant 1.000000e+00 : f32
    %31 = vector.broadcast %cst_21 : f32 to vector<24x8xf32>
    %32 = arith.subf %30, %31 : vector<24x8xf32>
    %33 = arith.select %27, %25, %32 : vector<24x8xi1>, vector<24x8xf32>
    %cst_22 = arith.constant 0.000000e+00 : f32
    %34 = vector.broadcast %cst_22 : f32 to vector<3x24x8xf32>
    %35 = arith.cmpf ogt, %2, %34 : vector<3x24x8xf32>
    %36 = vector.shape_cast %33 : vector<24x8xf32> to vector<1x24x8xf32>
    %cst_23 = arith.constant -1.000000e+30 : f32
    %37 = vector.shape_cast %36 : vector<1x24x8xf32> to vector<1x24x8xf32>
    %38 = vector.broadcast %37 : vector<1x24x8xf32> to vector<3x24x8xf32>
    %39 = vector.broadcast %cst_23 : f32 to vector<3x24x8xf32>
    %40 = arith.select %35, %38, %39 : vector<3x24x8xi1>, vector<3x24x8xf32>
    %cst_24 = arith.constant dense<0xFF800000> : vector<3x8xf32>
    %41 = vector.multi_reduction <maximumf>, %40, %cst_24 [1] : vector<3x24x8xf32> to vector<3x8xf32>
    %cst_25 = arith.constant dense<0.000000e+00> : vector<24x16xf32>
    %42 = tpu.matmul %1, %20, %cst_25 {dimension_numbers = #tpu.dot_dimension_numbers<[1], [0], [0], [1], [0, 0, 1, 1], [], []>} : vector<24x24xf32>, vector<24x16xf32>, vector<24x16xf32> -> vector<24x16xf32>
    %cst_26 = arith.constant 1.000000e+00 : f32
    %43 = vector.broadcast %cst_26 : f32 to vector<24x16xf32>
    %44 = arith.mulf %43, %20 : vector<24x16xf32>
    %45 = arith.addf %42, %44 : vector<24x16xf32>
    %c0_27 = arith.constant 0 : index
    %c0_28 = arith.constant 0 : index
    %46 = vector.load %arg7[%c0_27, %c0_28] : memref<16x32xf32, #tpu.memory_space<vmem>>, vector<16x32xf32>
    %cst_29 = arith.constant dense<0.000000e+00> : vector<24x32xf32>
    %47 = tpu.matmul %45, %46, %cst_29 {dimension_numbers = #tpu.dot_dimension_numbers<[1], [0], [0], [1], [0, 0, 1, 1], [], []>} : vector<24x16xf32>, vector<16x32xf32>, vector<24x32xf32> -> vector<24x32xf32>
    %c0_30 = arith.constant 0 : index
    %c0_31 = arith.constant 0 : index
    %48 = vector.load %arg8[%c0_30, %c0_31] : memref<1x32xf32, #tpu.memory_space<vmem>>, vector<1x32xf32>
    %49 = vector.broadcast %48 : vector<1x32xf32> to vector<24x32xf32>
    %50 = arith.addf %47, %49 : vector<24x32xf32>
    %cst_32 = arith.constant 0.000000e+00 : f32
    %51 = vector.broadcast %cst_32 : f32 to vector<24x32xf32>
    %52 = arith.cmpf ogt, %50, %51 : vector<24x32xf32>
    %cst_33 = arith.constant 0.000000e+00 : f32
    %53 = vector.broadcast %cst_33 : f32 to vector<24x32xf32>
    %54 = arith.minimumf %50, %53 : vector<24x32xf32>
    %55 = math.exp %54 : vector<24x32xf32>
    %cst_34 = arith.constant 1.000000e+00 : f32
    %56 = vector.broadcast %cst_34 : f32 to vector<24x32xf32>
    %57 = arith.subf %55, %56 : vector<24x32xf32>
    %58 = arith.select %52, %50, %57 : vector<24x32xi1>, vector<24x32xf32>
    %c0_35 = arith.constant 0 : index
    %c0_36 = arith.constant 0 : index
    %59 = vector.load %arg9[%c0_35, %c0_36] : memref<32x16xf32, #tpu.memory_space<vmem>>, vector<32x16xf32>
    %cst_37 = arith.constant dense<0.000000e+00> : vector<24x16xf32>
    %60 = tpu.matmul %58, %59, %cst_37 {dimension_numbers = #tpu.dot_dimension_numbers<[1], [0], [0], [1], [0, 0, 1, 1], [], []>} : vector<24x32xf32>, vector<32x16xf32>, vector<24x16xf32> -> vector<24x16xf32>
    %c0_38 = arith.constant 0 : index
    %c0_39 = arith.constant 0 : index
    %61 = vector.load %arg10[%c0_38, %c0_39] : memref<1x16xf32, #tpu.memory_space<vmem>>, vector<1x16xf32>
    %62 = vector.broadcast %61 : vector<1x16xf32> to vector<24x16xf32>
    %63 = arith.addf %60, %62 : vector<24x16xf32>
    %c0_40 = arith.constant 0 : index
    %c0_41 = arith.constant 0 : index
    %64 = vector.load %arg11[%c0_40, %c0_41] : memref<16x8xf32, #tpu.memory_space<vmem>>, vector<16x8xf32>
    %cst_42 = arith.constant dense<0.000000e+00> : vector<24x8xf32>
    %65 = tpu.matmul %63, %64, %cst_42 {dimension_numbers = #tpu.dot_dimension_numbers<[1], [0], [0], [1], [0, 0, 1, 1], [], []>} : vector<24x16xf32>, vector<16x8xf32>, vector<24x8xf32> -> vector<24x8xf32>
    %c0_43 = arith.constant 0 : index
    %c0_44 = arith.constant 0 : index
    %66 = vector.load %arg12[%c0_43, %c0_44] : memref<1x8xf32, #tpu.memory_space<vmem>>, vector<1x8xf32>
    %67 = vector.broadcast %66 : vector<1x8xf32> to vector<24x8xf32>
    %68 = arith.addf %65, %67 : vector<24x8xf32>
    %cst_45 = arith.constant 0.000000e+00 : f32
    %69 = vector.broadcast %cst_45 : f32 to vector<24x8xf32>
    %70 = arith.cmpf ogt, %68, %69 : vector<24x8xf32>
    %cst_46 = arith.constant 0.000000e+00 : f32
    %71 = vector.broadcast %cst_46 : f32 to vector<24x8xf32>
    %72 = arith.minimumf %68, %71 : vector<24x8xf32>
    %73 = math.exp %72 : vector<24x8xf32>
    %cst_47 = arith.constant 1.000000e+00 : f32
    %74 = vector.broadcast %cst_47 : f32 to vector<24x8xf32>
    %75 = arith.subf %73, %74 : vector<24x8xf32>
    %76 = arith.select %70, %68, %75 : vector<24x8xi1>, vector<24x8xf32>
    %77 = arith.addf %33, %76 : vector<24x8xf32>
    %cst_48 = arith.constant 0.000000e+00 : f32
    %78 = vector.broadcast %cst_48 : f32 to vector<3x24x8xf32>
    %79 = arith.cmpf ogt, %2, %78 : vector<3x24x8xf32>
    %80 = vector.shape_cast %76 : vector<24x8xf32> to vector<1x24x8xf32>
    %cst_49 = arith.constant -1.000000e+30 : f32
    %81 = vector.shape_cast %80 : vector<1x24x8xf32> to vector<1x24x8xf32>
    %82 = vector.broadcast %81 : vector<1x24x8xf32> to vector<3x24x8xf32>
    %83 = vector.broadcast %cst_49 : f32 to vector<3x24x8xf32>
    %84 = arith.select %79, %82, %83 : vector<3x24x8xi1>, vector<3x24x8xf32>
    %cst_50 = arith.constant dense<0xFF800000> : vector<3x8xf32>
    %85 = vector.multi_reduction <maximumf>, %84, %cst_50 [1] : vector<3x24x8xf32> to vector<3x8xf32>
    %86 = arith.addf %41, %85 : vector<3x8xf32>
    %cst_51 = arith.constant dense<0.000000e+00> : vector<24x16xf32>
    %87 = tpu.matmul %1, %63, %cst_51 {dimension_numbers = #tpu.dot_dimension_numbers<[1], [0], [0], [1], [0, 0, 1, 1], [], []>} : vector<24x24xf32>, vector<24x16xf32>, vector<24x16xf32> -> vector<24x16xf32>
    %cst_52 = arith.constant 1.000000e+00 : f32
    %88 = vector.broadcast %cst_52 : f32 to vector<24x16xf32>
    %89 = arith.mulf %88, %63 : vector<24x16xf32>
    %90 = arith.addf %87, %89 : vector<24x16xf32>
    %c0_53 = arith.constant 0 : index
    %c0_54 = arith.constant 0 : index
    %91 = vector.load %arg13[%c0_53, %c0_54] : memref<16x32xf32, #tpu.memory_space<vmem>>, vector<16x32xf32>
    %cst_55 = arith.constant dense<0.000000e+00> : vector<24x32xf32>
    %92 = tpu.matmul %90, %91, %cst_55 {dimension_numbers = #tpu.dot_dimension_numbers<[1], [0], [0], [1], [0, 0, 1, 1], [], []>} : vector<24x16xf32>, vector<16x32xf32>, vector<24x32xf32> -> vector<24x32xf32>
    %c0_56 = arith.constant 0 : index
    %c0_57 = arith.constant 0 : index
    %93 = vector.load %arg14[%c0_56, %c0_57] : memref<1x32xf32, #tpu.memory_space<vmem>>, vector<1x32xf32>
    %94 = vector.broadcast %93 : vector<1x32xf32> to vector<24x32xf32>
    %95 = arith.addf %92, %94 : vector<24x32xf32>
    %cst_58 = arith.constant 0.000000e+00 : f32
    %96 = vector.broadcast %cst_58 : f32 to vector<24x32xf32>
    %97 = arith.cmpf ogt, %95, %96 : vector<24x32xf32>
    %cst_59 = arith.constant 0.000000e+00 : f32
    %98 = vector.broadcast %cst_59 : f32 to vector<24x32xf32>
    %99 = arith.minimumf %95, %98 : vector<24x32xf32>
    %100 = math.exp %99 : vector<24x32xf32>
    %cst_60 = arith.constant 1.000000e+00 : f32
    %101 = vector.broadcast %cst_60 : f32 to vector<24x32xf32>
    %102 = arith.subf %100, %101 : vector<24x32xf32>
    %103 = arith.select %97, %95, %102 : vector<24x32xi1>, vector<24x32xf32>
    %c0_61 = arith.constant 0 : index
    %c0_62 = arith.constant 0 : index
    %104 = vector.load %arg15[%c0_61, %c0_62] : memref<32x8xf32, #tpu.memory_space<vmem>>, vector<32x8xf32>
    %cst_63 = arith.constant dense<0.000000e+00> : vector<24x8xf32>
    %105 = tpu.matmul %103, %104, %cst_63 {dimension_numbers = #tpu.dot_dimension_numbers<[1], [0], [0], [1], [0, 0, 1, 1], [], []>} : vector<24x32xf32>, vector<32x8xf32>, vector<24x8xf32> -> vector<24x8xf32>
    %c0_64 = arith.constant 0 : index
    %c0_65 = arith.constant 0 : index
    %106 = vector.load %arg16[%c0_64, %c0_65] : memref<1x8xf32, #tpu.memory_space<vmem>>, vector<1x8xf32>
    %107 = vector.broadcast %106 : vector<1x8xf32> to vector<24x8xf32>
    %108 = arith.addf %105, %107 : vector<24x8xf32>
    %c0_66 = arith.constant 0 : index
    %c0_67 = arith.constant 0 : index
    %109 = vector.load %arg17[%c0_66, %c0_67] : memref<8x8xf32, #tpu.memory_space<vmem>>, vector<8x8xf32>
    %cst_68 = arith.constant dense<0.000000e+00> : vector<24x8xf32>
    %110 = tpu.matmul %108, %109, %cst_68 {dimension_numbers = #tpu.dot_dimension_numbers<[1], [0], [0], [1], [0, 0, 1, 1], [], []>} : vector<24x8xf32>, vector<8x8xf32>, vector<24x8xf32> -> vector<24x8xf32>
    %c0_69 = arith.constant 0 : index
    %c0_70 = arith.constant 0 : index
    %111 = vector.load %arg18[%c0_69, %c0_70] : memref<1x8xf32, #tpu.memory_space<vmem>>, vector<1x8xf32>
    %112 = vector.broadcast %111 : vector<1x8xf32> to vector<24x8xf32>
    %113 = arith.addf %110, %112 : vector<24x8xf32>
    %cst_71 = arith.constant 0.000000e+00 : f32
    %114 = vector.broadcast %cst_71 : f32 to vector<24x8xf32>
    %115 = arith.cmpf ogt, %113, %114 : vector<24x8xf32>
    %cst_72 = arith.constant 0.000000e+00 : f32
    %116 = vector.broadcast %cst_72 : f32 to vector<24x8xf32>
    %117 = arith.minimumf %113, %116 : vector<24x8xf32>
    %118 = math.exp %117 : vector<24x8xf32>
    %cst_73 = arith.constant 1.000000e+00 : f32
    %119 = vector.broadcast %cst_73 : f32 to vector<24x8xf32>
    %120 = arith.subf %118, %119 : vector<24x8xf32>
    %121 = arith.select %115, %113, %120 : vector<24x8xi1>, vector<24x8xf32>
    %122 = arith.addf %77, %121 : vector<24x8xf32>
    %cst_74 = arith.constant 0.000000e+00 : f32
    %123 = vector.broadcast %cst_74 : f32 to vector<3x24x8xf32>
    %124 = arith.cmpf ogt, %2, %123 : vector<3x24x8xf32>
    %125 = vector.shape_cast %121 : vector<24x8xf32> to vector<1x24x8xf32>
    %cst_75 = arith.constant -1.000000e+30 : f32
    %126 = vector.shape_cast %125 : vector<1x24x8xf32> to vector<1x24x8xf32>
    %127 = vector.broadcast %126 : vector<1x24x8xf32> to vector<3x24x8xf32>
    %128 = vector.broadcast %cst_75 : f32 to vector<3x24x8xf32>
    %129 = arith.select %124, %127, %128 : vector<3x24x8xi1>, vector<3x24x8xf32>
    %cst_76 = arith.constant dense<0xFF800000> : vector<3x8xf32>
    %130 = vector.multi_reduction <maximumf>, %129, %cst_76 [1] : vector<3x24x8xf32> to vector<3x8xf32>
    %131 = arith.addf %86, %130 : vector<3x8xf32>
    %c0_77 = arith.constant 0 : index
    %c0_78 = arith.constant 0 : index
    %132 = vector.load %arg19[%c0_77, %c0_78] : memref<3x8xf32, #tpu.memory_space<vmem>>, vector<3x8xf32>
    tpu.vector_store %arg19[%c0_77, %c0_78], %131 {strides = array<i32>} : memref<3x8xf32, #tpu.memory_space<vmem>>, vector<3x8xf32>,
    %c0_79 = arith.constant 0 : index
    %c0_80 = arith.constant 0 : index
    %133 = vector.load %arg20[%c0_79, %c0_80] : memref<24x8xf32, #tpu.memory_space<vmem>>, vector<24x8xf32>
    tpu.vector_store %arg20[%c0_79, %c0_80], %122 {strides = array<i32>} : memref<24x8xf32, #tpu.memory_space<vmem>>, vector<24x8xf32>,
    %c0_81 = arith.constant 0 : index
    %c0_82 = arith.constant 0 : index
    %134 = vector.load %arg21[%c0_81, %c0_82] : memref<24x8xf32, #tpu.memory_space<vmem>>, vector<24x8xf32>
    tpu.vector_store %arg21[%c0_81, %c0_82], %108 {strides = array<i32>} : memref<24x8xf32, #tpu.memory_space<vmem>>, vector<24x8xf32>,
    return
  }
}

</mosaic_0001>

<bundles_post_ra>
// kernel: gnn_forward.1
= control target key start
LH: loop header
LB: loop body
LE: loop exit
PB: predicated region body
PF: predicated region fallthrough
CT: control target
= control target key end

     0   :  { %s2201_s0 = inlined_call_operand.vmem [shape: f32[24,16], index: 0, kind: input, shape index: {}]   ;;  %s2202_s1 = inlined_call_operand.vmem [shape: f32[24,24], index: 1, kind: input, shape index: {}]   ;;  %s2203_s2 = inlined_call_operand.vmem [shape: f32[3,24,8], index: 2, kind: input, shape index: {}]   ;;  %s2204_s3 = inlined_call_operand.vmem [shape: f32[16,16], index: 3, kind: input, shape index: {}]   ;;  %s2205_s4 = inlined_call_operand.vmem [shape: f32[1,16], index: 4, kind: input, shape index: {}]   ;;  %s2206_s5 = inlined_call_operand.vmem [shape: f32[16,8], index: 5, kind: input, shape index: {}]   ;;  %s2207_s6 = inlined_call_operand.vmem [shape: f32[1,8], index: 6, kind: input, shape index: {}]   ;;  %s2208_s7 = inlined_call_operand.vmem [shape: f32[16,32], index: 7, kind: input, shape index: {}]   ;;  %s2209_s8 = inlined_call_operand.vmem [shape: f32[1,32], index: 8, kind: input, shape index: {}]   ;;  %s2210_s9 = inlined_call_operand.vmem [shape: f32[32,16], index: 9, kind: input, shape index: {}]   ;;  %s2211_s10 = inlined_call_operand.vmem [shape: f32[1,16], index: 10, kind: input, shape index: {}]   ;;  %s2212_s11 = inlined_call_operand.vmem [shape: f32[16,8], index: 11, kind: input, shape index: {}]   ;;  %s2213_s12 = inlined_call_operand.vmem [shape: f32[1,8], index: 12, kind: input, shape index: {}]   ;;  %s2214_s13 = inlined_call_operand.vmem [shape: f32[16,32], index: 13, kind: input, shape index: {}]   ;;  %s2215_s14 = inlined_call_operand.vmem [shape: f32[1,32], index: 14, kind: input, shape index: {}]   ;;  %s2216_s15 = inlined_call_operand.vmem [shape: f32[32,8], index: 15, kind: input, shape index: {}]   ;;  %s2217_s16 = inlined_call_operand.vmem [shape: f32[1,8], index: 16, kind: input, shape index: {}]   ;;  %s2218_s17 = inlined_call_operand.vmem [shape: f32[8,8], index: 17, kind: input, shape index: {}]   ;;  %s2219_s18 = inlined_call_operand.vmem [shape: f32[1,8], index: 18, kind: input, shape index: {}]   ;;  %s2220_s19 = inlined_call_operand.hbm [shape: f32[3,8], index: 19, kind: output, shape index: {0}]   ;;  %s2221_s20 = inlined_call_operand.vmem [shape: f32[24,8], index: 20, kind: output, shape index: {1}]   ;;  %s2222_s21 = inlined_call_operand.vmem [shape: f32[24,8], index: 21, kind: output, shape index: {2}]  }
   0x1   :  { %2229 = sst [smem:[#allocation5_spill]] %s2201_s0 }
   0x2   :  { %2230 = sst [smem:[#allocation6_spill]] %s2202_s1 }
   0x3   :  { %2231 = sst [smem:[#allocation7_spill]] %s2203_s2 }
   0x4   :  { %2232 = sst [smem:[#allocation8_spill]] %s2204_s3 }
   0x5   :  { %2233 = sst [smem:[#allocation9_spill]] %s2205_s4 }
   0x6   :  { %2234 = sst [smem:[#allocation10_spill]] %s2206_s5 }
   0x7   :  { %s2235_s26 = sld [smem:[#allocation8_spill]]  ;;  %v1652_v1 = vmov 0.0   ;;  %vm1653_vm0 = vmmov 0   ;;  %vm90_vm1 = vcmask 130048  }
   0x8   :  { %1451 = vmatprep.subr.mxu0 %v1652_v1  ;;  %1455 = vmatprep.mubr.msk.f32.mxu0 %vm1653_vm0, %v1652_v1  ;;  %s2236_s0 = sld [smem:[#allocation5_spill]] }
   0x9   :  { %1464 = vmatprep.subr.mxu1 %v1652_v1 }
   0xd   :  { %v82_v0 = vld [vmem:[%s2235_s26 + $0x8] sm:$0xff]  ;;  %v81_v2 = vld [vmem:[%s2235_s26] sm:$0xff] }
   0xe   :  { %1452 = vmatpush3.msra.mxu0 %v82_v0  ;;  %v66_v3 = vld [vmem:[%s2236_s0] sm:$0xff] }
   0xf   :  { %27 = vsyncpa [#allocation3], 0  ;;  %1453 = vmatprep.subr.mxu0 %v1652_v1  ;;  %1468 = vmatprep.mubr.msk.f32.mxu1 %vm1653_vm0, %v1652_v1  ;;  %v67_v4 = vld [vmem:[%s2236_s0 + $0x8] sm:$0xff]  ;;  %v68_v5 = vld [vmem:[%s2236_s0 + $0x10] sm:$0xff]  ;;  %s2237_s24 = sld [smem:[#allocation10_spill]]  ;;  %vm375_vm2 = vcmask 195584  }
  0x10   :  { %1454 = vmatpush3.msra.mxu0 %v81_v2  ;;  %s2238_s3 = sld [smem:[#allocation9_spill]]  ;;  %v466_v48 = vld [vmem:[%s2208_s7 + $0x8] sm:$0xff]  ;;  %v465_v49 = vld [vmem:[%s2208_s7] sm:$0xff]  ;;  %vm341_vm7 = vcmask 64512  }
  0x11   :  { %1456 = vmatmul.mubr.msk.f32.vlgmr.msra.gmra.mxu0 %vm90_vm1, %v66_v3  ;;  %1477 = vmatprep.subr.mxu0 %v1652_v1  ;;  %s2239_s0 = sld [smem:[#allocation6_spill]]  ;;  %v1347_v50 = vld [vmem:[%s2207_s6] ss:$0 sm:$0xff] }
  0x12   :  { %1458 = vmatprep.mubr.msk.f32.mxu0 %vm1653_vm0, %v1652_v1  ;;  %s2240_s27 = sld [smem:[#allocation7_spill]] }
  0x15   :  { %1459 = vmatmul.mubr.msk.f32.gmra.mxu0 %vm90_vm1, %v67_v4  ;;  %v208_v6 = vld [vmem:[%s2237_s24 + $0x8] sm:$0xff]  ;;  %v207_v7 = vld [vmem:[%s2237_s24] sm:$0xff] }
  0x16   :  { %1461 = vmatprep.mubr.msk.f32.mxu0 %vm1653_vm0, %v1652_v1  ;;  %1465 = vmatpush3.msra.mxu1 %v208_v6  ;;  %v1343_v8 = vld [vmem:[%s2238_s3] ss:$0 sm:$0xff] }
  0x17   :  { %1466 = vmatprep.subr.mxu1 %v1652_v1  ;;  %v1821_v45 = vld [vmem:[%s2239_s0] sm:$0xff]  ;;  %v1832_v46 = vld [vmem:[%s2239_s0 + $0x8] sm:$0xff]  ;;  %v1841_v47 = vld [vmem:[%s2239_s0 + $0x10] sm:$0xff] }
  0x18   :  { %1467 = vmatpush3.msra.mxu1 %v207_v7 }
  0x19   :  { %1462 = vmatmul.mubr.msk.f32.gmra.mxu0 %vm90_vm1, %v68_v5  ;;  %1492 = vmatprep.subr.mxu1 %v1652_v1 }
  0x1a   :  { %1483 = vmatprep.mubr.msk.f32.mxu0 %vm1653_vm0, %v1652_v1 }
  0xd1   :  { %v166_v9 = vpop.f32.mrf.mxu0 }
  0xd2   :  { %v167_v10 = vadd.f32 %v1343_v8, %v166_v9 }
  0xd3   :  { %v1457_v11 = vpop.f32.mrf.mxu0 }
  0xd4   :  { %v183_v12 = vmul.f32 0.044715, %v167_v10  ;;  %v180_v34 = vmul.f32 0.5, %v167_v10  ;;  %v1870_v11 = vld [vmem:[%s2240_s27 + $0x18] sm:$0xff] }
  0xd5   :  { %v171_v13 = vpop.f32.mrf.mxu0  ;;  %vm326_vm5 = vcmp.gt.f32.partialorder %v1870_v11, 0.0 }
  0xd6   :  { %v186_v14 = vmul.f32 %v183_v12, %v167_v10  ;;  %v172_v15 = vadd.f32 %v1343_v8, %v171_v13 }
  0xd7   :  { %v1460_v16 = vpop.f32.mrf.mxu0 }
  0xd8   :  { %v189_v17 = vmul.f32 %v186_v14, %v167_v10  ;;  %v184_v18 = vmul.f32 0.044715, %v172_v15  ;;  %v181_v38 = vmul.f32 0.5, %v172_v15 }
  0xd9   :  { %v176_v19 = vpop.f32.mrf.mxu0 }
  0xda   :  { %v192_v20 = vadd.f32 %v189_v17, %v167_v10  ;;  %v187_v21 = vmul.f32 %v184_v18, %v172_v15  ;;  %v177_v22 = vadd.f32 %v1343_v8, %v176_v19  ;;  %v1865_v10 = vld [vmem:[%s2240_s27] sm:$0xff]  ;;  %v1887_v19 = vld [vmem:[%s2240_s27 + $0x8] sm:$0xff] }
  0xdb   :  { %v1463_v23 = vpop.f32.mrf.mxu0  ;;  %vm323_vm4 = vcmp.gt.f32.partialorder %v1865_v10, 0.0  ;;  %vm324_vm9 = vcmp.gt.f32.partialorder %v1887_v19, 0.0 }
  0xdc   :  { %v190_v24 = vmul.f32 %v187_v21, %v172_v15  ;;  %v185_v25 = vmul.f32 0.044715, %v177_v22  ;;  %v195_v26 = vmul.f32 0.7978846, %v192_v20  ;;  %v182_v42 = vmul.f32 0.5, %v177_v22  ;;  %v1892_v20 = vld [vmem:[%s2240_s27 + $0x20] sm:$0xff] }
  0xdd   :  { %v1897_v21 = vld [vmem:[%s2240_s27 + $0x38] sm:$0xff]  ;;  %v1905_v23 = vld [vmem:[%s2240_s27 + $0x10] sm:$0xff]  ;;  %vm327_vm10 = vcmp.gt.f32.partialorder %v1892_v20, 0.0 }
  0xde   :  { %v193_v27 = vadd.f32 %v190_v24, %v172_v15  ;;  %v188_v28 = vmul.f32 %v185_v25, %v177_v22  ;;  %1594 = vtanh.f32 %v195_v26  ;;  %v1877_v15 = vld [vmem:[%s2240_s27 + $0x30] sm:$0xff]  ;;  %v1910_v24 = vld [vmem:[%s2240_s27 + $0x28] sm:$0xff]  ;;  %v1915_v25 = vld [vmem:[%s2240_s27 + $0x40] sm:$0xff]  ;;  %vm330_vm11 = vcmp.gt.f32.partialorder %v1897_v21, 0.0 }
  0xdf   :  { %vm329_vm6 = vcmp.gt.f32.partialorder %v1877_v15, 0.0  ;;  %vm325_vm12 = vcmp.gt.f32.partialorder %v1905_v23, 0.0  ;;  %vm328_vm13 = vcmp.gt.f32.partialorder %v1910_v24, 0.0  ;;  %vm2228_vm14 = vcmp.gt.f32.partialorder %v1915_v25, 0.0 }
  0xe0   :  { %v191_v29 = vmul.f32 %v188_v28, %v177_v22  ;;  %v196_v30 = vmul.f32 0.7978846, %v193_v27 }
  0xe2   :  { %v194_v31 = vadd.f32 %v191_v29, %v177_v22  ;;  %1596 = vtanh.f32 %v196_v30 }
  0xe4   :  { %v197_v32 = vmul.f32 0.7978846, %v194_v31 }
  0xe6   :  { %1598 = vtanh.f32 %v197_v32 }
  0xeb   :  { %v1595_v33 = vpop.eup %1594 }
  0xec   :  { %v201_v35 = vadd.f32 1.0, %v1595_v33 }
  0xee   :  { %v204_v36 = vmul.f32 %v201_v35, %v180_v34 }
  0xef   :  { %v1597_v37 = vpop.eup %1596 }
  0xf0   :  { %1469 = vmatmul.mubr.msk.f32.vlgmr.msra.gmra.mxu1 %vm90_vm1, %v204_v36  ;;  %v202_v39 = vadd.f32 1.0, %v1597_v37 }
  0xf1   :  { %1471 = vmatprep.mubr.msk.f32.mxu1 %vm1653_vm0, %v1652_v1  ;;  %1493 = vmatpush3.msra.mxu1 %v466_v48 }
  0xf2   :  { %v205_v40 = vmul.f32 %v202_v39, %v181_v38  ;;  %1494 = vmatprep.subr.mxu1 %v1652_v1 }
  0xf3   :  { %v1599_v41 = vpop.eup %1598  ;;  %1495 = vmatpush3.msra.mxu1 %v465_v49 }
  0xf4   :  { %1472 = vmatmul.mubr.msk.f32.gmra.mxu1 %vm90_vm1, %v205_v40  ;;  %v203_v43 = vadd.f32 1.0, %v1599_v41  ;;  %1522 = vmatprep.subr.mxu1 %v1652_v1 }
  0xf5   :  { %1474 = vmatprep.mubr.msk.f32.mxu1 %vm1653_vm0, %v1652_v1 }
  0xf6   :  { %v206_v44 = vmul.f32 %v203_v43, %v182_v42 }
  0xf8   :  { %1475 = vmatmul.mubr.msk.f32.gmra.mxu1 %vm90_vm1, %v206_v44  ;;  %1478 = vmatpush3.msra.mxu0 %v206_v44 }
  0xf9   :  { %1479 = vmatprep.subr.mxu0 %v1652_v1  ;;  %1496 = vmatprep.mubr.msk.f32.mxu1 %vm1653_vm0, %v1652_v1 }
  0xfa   :  { %1480 = vmatpush3.msra.mxu0 %v205_v40 }
  0xfb   :  { %1481 = vmatprep.subr.mxu0 %v1652_v1 }
  0xfc   :  { %1482 = vmatpush3.msra.mxu0 %v204_v36 }
  0xfd   :  { %1484 = vmatmul.mubr.msk.f32.vlgmr.msra.gmra.mxu0 %vm375_vm2, %v1821_v45  ;;  %1505 = vmatprep.subr.mxu0 %v1652_v1 }
  0xfe   :  { %1486 = vmatprep.mubr.msk.f32.mxu0 %vm1653_vm0, %v1652_v1 }
 0x101   :  { %1487 = vmatmul.mubr.msk.f32.gmra.mxu0 %vm375_vm2, %v1832_v46 }
 0x102   :  { %1489 = vmatprep.mubr.msk.f32.mxu0 %vm1653_vm0, %v1652_v1 }
 0x105   :  { %1490 = vmatmul.mubr.msk.f32.gmra.mxu0 %vm375_vm2, %v1841_v47 }
 0x106   :  { %1513 = vmatprep.mubr.msk.f32.mxu0 %vm1653_vm0, %v1652_v1 }
 0x1b0   :  { %v291_v51 = vpop.f32.mrf.mxu1 }
 0x1b1   :  { %v292_v52 = vadd.f32 %v1347_v50, %v291_v51 }
 0x1b2   :  { %v1470_v53 = vpop.f32.mrf.mxu1 }
 0x1b3   :  { %v308_v54 = vmin.f32 %v292_v52, 0.0  ;;  %vm305_vm3 = vcmp.gt.f32.partialorder %v292_v52, 0.0 }
 0x1b4   :  { %v296_v55 = vpop.f32.mrf.mxu1 }
 0x1b5   :  { %v311_v56 = vmul.f32 1.442695, %v308_v54  ;;  %v297_v57 = vadd.f32 %v1347_v50, %v296_v55 }
 0x1b6   :  { %v1473_v58 = vpop.f32.mrf.mxu1 }
 0x1b7   :  { %1600 = vpow2.f32 %v311_v56  ;;  %v309_v59 = vmin.f32 %v297_v57, 0.0  ;;  %vm306_vm8 = vcmp.gt.f32.partialorder %v297_v57, 0.0  ;;  %v583_v58 = vld [vmem:[%s2210_s9 + $0x10] sm:$0xff] }
 0x1b8   :  { %v301_v60 = vpop.f32.mrf.mxu1 }
 0x1b9   :  { %v313_v61 = vmul.f32 1.442695, %v309_v59  ;;  %v302_v62 = vadd.f32 %v1347_v50, %v301_v60  ;;  %v582_v59 = vld [vmem:[%s2210_s9 + $0x8] sm:$0xff]  ;;  %v581_v60 = vld [vmem:[%s2210_s9] sm:$0xff] }
 0x1ba   :  { %v1476_v63 = vpop.f32.mrf.mxu1 }
 0x1bb   :  { %1602 = vpow2.f32 %v313_v61  ;;  %v310_v0 = vmin.f32 %v302_v62, 0.0  ;;  %vm307_vm15 = vcmp.gt.f32.partialorder %v302_v62, 0.0  ;;  %v1357_v61 = vld [vmem:[%s2209_s8] ss:$0 sm:$0xff] }
 0x1bd   :  { %v315_v2 = vmul.f32 1.442695, %v310_v0  ;;  %v451_v3 = vpop.f32.mrf.mxu0 }
 0x1be   :  { %v452_v4 = vadd.f32 %v451_v3, %v204_v36 }
 0x1bf   :  { %1604 = vpow2.f32 %v315_v2  ;;  %v1485_v5 = vpop.f32.mrf.mxu0 }
 0x1c0   :  { %1497 = vmatmul.mubr.msk.f32.vlgmr.msra.gmra.mxu1 %vm90_vm1, %v452_v4 }
 0x1c1   :  { %v456_v6 = vpop.f32.mrf.mxu0  ;;  %1499 = vmatprep.mubr.msk.f32.mxu1 %vm1653_vm0, %v1652_v1 }
 0x1c2   :  { %v457_v7 = vadd.f32 %v456_v6, %v205_v40 }
 0x1c3   :  { %v1488_v8 = vpop.f32.mrf.mxu0 }
 0x1c4   :  { %v1601_v9 = vpop.eup %1600  ;;  %1500 = vmatmul.mubr.msk.f32.gmra.mxu1 %vm90_vm1, %v457_v7 }
 0x1c5   :  { %v1351_v12 = vadd.f32 -1.0, %v1601_v9  ;;  %v461_v13 = vpop.f32.mrf.mxu0  ;;  %1502 = vmatprep.mubr.msk.f32.mxu1 %vm1653_vm0, %v1652_v1 }
 0x1c6   :  { %v462_v14 = vadd.f32 %v461_v13, %v206_v44 }
 0x1c7   :  { %v1491_v16 = vpop.f32.mrf.mxu0  ;;  %v1879_v18 = vsel %vm305_vm3, %v292_v52, %v1351_v12  ;;  %vm592_vm3 = vcmask 261120  }
 0x1c8   :  { %v1603_v17 = vpop.eup %1602  ;;  %1503 = vmatmul.mubr.msk.f32.gmra.mxu1 %vm90_vm1, %v462_v14  ;;  %v332_v26 = vsel %vm323_vm4, %v1879_v18, -1e+30  ;;  %v335_v27 = vsel %vm326_vm5, %v1879_v18, -1e+30  ;;  %v338_v31 = vsel %vm329_vm6, %v1879_v18, -1e+30 }
 0x1c9   :  { %v1352_v22 = vadd.f32 -1.0, %v1603_v17  ;;  %1526 = vmatprep.mubr.msk.f32.mxu1 %vm1653_vm0, %v1652_v1  ;;  %v342_v32 = vsel %vm341_vm7, %v332_v26, -inf  ;;  %v353_v33 = vsel %vm341_vm7, %v335_v27, -inf  ;;  %v364_v41 = vsel %vm341_vm7, %v338_v31, -inf }
 0x1cb   :  { %v1923_v29 = vsel %vm306_vm8, %v297_v57, %v1352_v22  ;;  %v584_v57 = vld [vmem:[%s2210_s9 + $0x18] sm:$0xff] }
 0x1cc   :  { %v1605_v28 = vpop.eup %1604  ;;  %v333_v34 = vsel %vm324_vm9, %v1923_v29, -1e+30  ;;  %v336_v35 = vsel %vm327_vm10, %v1923_v29, -1e+30  ;;  %v339_v36 = vsel %vm330_vm11, %v1923_v29, -1e+30  ;;  %1506 = vmatpush3.msra.mxu0 %v584_v57 }
 0x1cd   :  { %v1353_v30 = vadd.f32 -1.0, %v1605_v28  ;;  %v343_v51 = vsel %vm341_vm7, %v333_v34, -inf  ;;  %v354_v52 = vsel %vm341_vm7, %v336_v35, -inf  ;;  %v365_v53 = vsel %vm341_vm7, %v339_v36, -inf  ;;  %1507 = vmatprep.subr.mxu0 %v1652_v1  ;;  %v683_v34 = vld [vmem:[%s2212_s11 + $0x8] sm:$0xff]  ;;  %v682_v35 = vld [vmem:[%s2212_s11] sm:$0xff] }
 0x1ce   :  { %1508 = vmatpush3.msra.mxu0 %v583_v58  ;;  %1523 = vmatpush3.msra.mxu1 %v683_v34  ;;  %v1364_v36 = vld [vmem:[%s2211_s10] ss:$0 sm:$0xff] }
 0x1cf   :  { %v1945_v37 = vsel %vm307_vm15, %v302_v62, %v1353_v30  ;;  %1509 = vmatprep.subr.mxu0 %v1652_v1  ;;  %1524 = vmatprep.subr.mxu1 %v1652_v1 }
 0x1d0   :  { %v334_v38 = vsel %vm325_vm12, %v1945_v37, -1e+30  ;;  %v337_v39 = vsel %vm328_vm13, %v1945_v37, -1e+30  ;;  %v340_v40 = vsel %vm2228_vm14, %v1945_v37, -1e+30  ;;  %1510 = vmatpush3.msra.mxu0 %v582_v59  ;;  %1525 = vmatpush3.msra.mxu1 %v682_v35 }
 0x1d1   :  { %v344_v42 = vsel %vm341_vm7, %v334_v38, -inf  ;;  %v355_v43 = vsel %vm341_vm7, %v337_v39, -inf  ;;  %v366_v44 = vsel %vm341_vm7, %v340_v40, -inf  ;;  %1511 = vmatprep.subr.mxu0 %v1652_v1  ;;  %1550 = vmatprep.subr.mxu1 %v1652_v1 }
 0x1d2   :  { %v345_v48 = vmax.f32 %v342_v32, %v344_v42  ;;  %v356_v49 = vmax.f32 %v353_v33, %v355_v43  ;;  %v367_v50 = vmax.f32 %v364_v41, %v366_v44  ;;  %1512 = vmatpush3.msra.mxu0 %v581_v60 }
 0x1d3   :  { %1535 = vmatprep.subr.mxu0 %v1652_v1 }
 0x1d4   :  { %v1963_v54 = vmax.f32 %v345_v48, %v343_v51  ;;  %v1965_v55 = vmax.f32 %v356_v49, %v354_v52  ;;  %v1967_v56 = vmax.f32 %v367_v50, %v365_v53 }
 0x280   :  { %v549_v62 = vpop.f32.mrf.mxu1 }
 0x281   :  { %v550_v63 = vadd.f32 %v1357_v61, %v549_v62 }
 0x282   :  { %v1498_v0 = vpop.f32.mrf.mxu1 }
 0x283   :  { %v566_v2 = vmin.f32 %v550_v63, 0.0  ;;  %vm563_vm8 = vcmp.gt.f32.partialorder %v550_v63, 0.0 }
 0x284   :  { %v554_v3 = vpop.f32.mrf.mxu1 }
 0x285   :  { %v569_v4 = vmul.f32 1.442695, %v566_v2  ;;  %v555_v5 = vadd.f32 %v1357_v61, %v554_v3 }
 0x286   :  { %v1501_v6 = vpop.f32.mrf.mxu1 }
 0x287   :  { %1606 = vpow2.f32 %v569_v4  ;;  %v567_v7 = vmin.f32 %v555_v5, 0.0  ;;  %vm564_vm15 = vcmp.gt.f32.partialorder %v555_v5, 0.0 }
 0x288   :  { %v559_v8 = vpop.f32.mrf.mxu1 }
 0x289   :  { %v571_v9 = vmul.f32 1.442695, %v567_v7  ;;  %v560_v12 = vadd.f32 %v1357_v61, %v559_v8 }
 0x28a   :  { %v1504_v13 = vpop.f32.mrf.mxu1 }
 0x28b   :  { %1608 = vpow2.f32 %v571_v9  ;;  %v568_v14 = vmin.f32 %v560_v12, 0.0  ;;  %vm565_vm14 = vcmp.gt.f32.partialorder %v560_v12, 0.0 }
 0x28d   :  { %v573_v16 = vmul.f32 1.442695, %v568_v14 }
 0x28f   :  { %1610 = vpow2.f32 %v573_v16 }
 0x294   :  { %v1607_v17 = vpop.eup %1606 }
 0x295   :  { %v1361_v22 = vadd.f32 -1.0, %v1607_v17 }
 0x297   :  { %v578_v26 = vsel %vm563_vm8, %v550_v63, %v1361_v22  ;;  %vm2241_vm8 = vcmp.gt.f32.partialorder %v1915_v25, 0.0 }
 0x298   :  { %v1609_v27 = vpop.eup %1608  ;;  %1514 = vmatmul.mubr.msk.f32.vlgmr.msra.gmra.mxu0 %vm592_vm3, %v578_v26 }
 0x299   :  { %1516 = vmatprep.mubr.msk.f32.mxu0 %vm1653_vm0, %v1652_v1  ;;  %v1362_v28 = vadd.f32 -1.0, %v1609_v27 }
 0x29b   :  { %v579_v30 = vsel %vm564_vm15, %v555_v5, %v1362_v28 }
 0x29c   :  { %v1611_v31 = vpop.eup %1610  ;;  %1517 = vmatmul.mubr.msk.f32.gmra.mxu0 %vm592_vm3, %v579_v30  ;;  %v347_v30 = vrot.slane %v1963_v54, 4 }
 0x29d   :  { %1519 = vmatprep.mubr.msk.f32.mxu0 %vm1653_vm0, %v1652_v1  ;;  %v1363_v32 = vadd.f32 -1.0, %v1611_v31  ;;  %v358_v31 = vrot.slane %v1965_v55, 4 }
 0x29f   :  { %v580_v33 = vsel %vm565_vm14, %v560_v12, %v1363_v32  ;;  %v369_v32 = vrot.slane %v1967_v56, 4 }
 0x2a0   :  { %1520 = vmatmul.mubr.msk.f32.gmra.mxu0 %vm592_vm3, %v580_v33 }
 0x2a1   :  { %1541 = vmatprep.mubr.msk.f32.mxu0 %vm1653_vm0, %v1652_v1 }
 0x358   :  { %v668_v38 = vpop.f32.mrf.mxu0 }
 0x359   :  { %v669_v39 = vadd.f32 %v1364_v36, %v668_v38 }
 0x35a   :  { %v1515_v40 = vpop.f32.mrf.mxu0 }
 0x35b   :  { %1527 = vmatmul.mubr.msk.f32.vlgmr.msra.gmra.mxu1 %vm90_vm1, %v669_v39  ;;  %v359_v40 = vmax.f32 %v1965_v55, %v358_v31 }
 0x35c   :  { %v673_v41 = vpop.f32.mrf.mxu0  ;;  %1529 = vmatprep.mubr.msk.f32.mxu1 %vm1653_vm0, %v1652_v1 }
 0x35d   :  { %v674_v42 = vadd.f32 %v1364_v36, %v673_v41  ;;  %v370_v41 = vmax.f32 %v1967_v56, %v369_v32 }
 0x35e   :  { %v1518_v43 = vpop.f32.mrf.mxu0 }
 0x35f   :  { %1530 = vmatmul.mubr.msk.f32.gmra.mxu1 %vm90_vm1, %v674_v42 }
 0x360   :  { %v678_v44 = vpop.f32.mrf.mxu0  ;;  %1532 = vmatprep.mubr.msk.f32.mxu1 %vm1653_vm0, %v1652_v1 }
 0x361   :  { %v679_v48 = vadd.f32 %v1364_v36, %v678_v44 }
 0x362   :  { %v1521_v49 = vpop.f32.mrf.mxu0 }
 0x363   :  { %1533 = vmatmul.mubr.msk.f32.gmra.mxu1 %vm90_vm1, %v679_v48  ;;  %1536 = vmatpush3.msra.mxu0 %v679_v48 }
 0x364   :  { %1537 = vmatprep.subr.mxu0 %v1652_v1  ;;  %1554 = vmatprep.mubr.msk.f32.mxu1 %vm1653_vm0, %v1652_v1 }
 0x365   :  { %1538 = vmatpush3.msra.mxu0 %v674_v42 }
 0x366   :  { %1539 = vmatprep.subr.mxu0 %v1652_v1 }
 0x367   :  { %1540 = vmatpush3.msra.mxu0 %v669_v39 }
 0x368   :  { %1542 = vmatmul.mubr.msk.f32.vlgmr.msra.gmra.mxu0 %vm375_vm2, %v1821_v45  ;;  %1563 = vmatprep.subr.mxu0 %v1652_v1  ;;  %v927_v45 = vld [vmem:[%s2214_s13 + $0x8] sm:$0xff] }
 0x369   :  { %1544 = vmatprep.mubr.msk.f32.mxu0 %vm1653_vm0, %v1652_v1  ;;  %1551 = vmatpush3.msra.mxu1 %v927_v45 }
 0x36a   :  { %1552 = vmatprep.subr.mxu1 %v1652_v1 }
 0x36c   :  { %1545 = vmatmul.mubr.msk.f32.gmra.mxu0 %vm375_vm2, %v1832_v46  ;;  %v926_v46 = vld [vmem:[%s2214_s13] sm:$0xff] }
 0x36d   :  { %1547 = vmatprep.mubr.msk.f32.mxu0 %vm1653_vm0, %v1652_v1  ;;  %1553 = vmatpush3.msra.mxu1 %v926_v46 }
 0x36e   :  { %1580 = vmatprep.subr.mxu1 %v1652_v1 }
 0x370   :  { %1548 = vmatmul.mubr.msk.f32.gmra.mxu0 %vm375_vm2, %v1841_v47  ;;  %v1368_v47 = vld [vmem:[%s2213_s12] ss:$0 sm:$0xff] }
 0x371   :  { %1571 = vmatprep.mubr.msk.f32.mxu0 %vm1653_vm0, %v1652_v1 }
 0x41b   :  { %v766_v50 = vpop.f32.mrf.mxu1 }
 0x41c   :  { %v767_v51 = vadd.f32 %v1368_v47, %v766_v50 }
 0x41d   :  { %v1528_v52 = vpop.f32.mrf.mxu1 }
 0x41e   :  { %v783_v53 = vmin.f32 %v767_v51, 0.0  ;;  %vm780_vm2 = vcmp.gt.f32.partialorder %v767_v51, 0.0 }
 0x41f   :  { %v771_v57 = vpop.f32.mrf.mxu1 }
 0x420   :  { %v786_v58 = vmul.f32 1.442695, %v783_v53  ;;  %v772_v59 = vadd.f32 %v1368_v47, %v771_v57 }
 0x421   :  { %v1531_v60 = vpop.f32.mrf.mxu1 }
 0x422   :  { %1612 = vpow2.f32 %v786_v58  ;;  %v784_v61 = vmin.f32 %v772_v59, 0.0  ;;  %vm781_vm14 = vcmp.gt.f32.partialorder %v772_v59, 0.0  ;;  %v360_v60 = vrot.slane %v359_v40, 2 }
 0x423   :  { %v776_v62 = vpop.f32.mrf.mxu1 }
 0x424   :  { %v788_v63 = vmul.f32 1.442695, %v784_v61  ;;  %v777_v0 = vadd.f32 %v1368_v47, %v776_v62 }
 0x425   :  { %v1534_v2 = vpop.f32.mrf.mxu1 }
 0x426   :  { %1614 = vpow2.f32 %v788_v63  ;;  %v785_v3 = vmin.f32 %v777_v0, 0.0 }
 0x428   :  { %v790_v4 = vmul.f32 1.442695, %v785_v3  ;;  %v912_v5 = vpop.f32.mrf.mxu0 }
 0x429   :  { %v913_v6 = vadd.f32 %v912_v5, %v669_v39  ;;  %v348_v39 = vmax.f32 %v1963_v54, %v347_v30 }
 0x42a   :  { %1616 = vpow2.f32 %v790_v4  ;;  %v1543_v7 = vpop.f32.mrf.mxu0  ;;  %v371_v4 = vrot.slane %v370_v41, 2 }
 0x42b   :  { %1555 = vmatmul.mubr.msk.f32.vlgmr.msra.gmra.mxu1 %vm90_vm1, %v913_v6  ;;  %v349_v57 = vrot.slane %v348_v39, 2 }
 0x42c   :  { %v917_v8 = vpop.f32.mrf.mxu0  ;;  %1557 = vmatprep.mubr.msk.f32.mxu1 %vm1653_vm0, %v1652_v1 }
 0x42d   :  { %v918_v9 = vadd.f32 %v917_v8, %v674_v42  ;;  %v350_v8 = vmax.f32 %v348_v39, %v349_v57 }
 0x42e   :  { %v1546_v12 = vpop.f32.mrf.mxu0 }
 0x42f   :  { %v1613_v13 = vpop.eup %1612  ;;  %1558 = vmatmul.mubr.msk.f32.gmra.mxu1 %vm90_vm1, %v918_v9  ;;  %v361_v9 = vmax.f32 %v359_v40, %v360_v60 }
 0x430   :  { %v1372_v14 = vadd.f32 -1.0, %v1613_v13  ;;  %v922_v16 = vpop.f32.mrf.mxu0  ;;  %1560 = vmatprep.mubr.msk.f32.mxu1 %vm1653_vm0, %v1652_v1 }
 0x431   :  { %v923_v17 = vadd.f32 %v922_v16, %v679_v48  ;;  %v372_v16 = vmax.f32 %v370_v41, %v371_v4  ;;  %v362_v30 = vrot.slane %v361_v9, 1 }
 0x432   :  { %v795_v22 = vsel %vm780_vm2, %v767_v51, %v1372_v14  ;;  %v1549_v26 = vpop.f32.mrf.mxu0 }
 0x433   :  { %v1615_v27 = vpop.eup %1614  ;;  %v2050_v28 = vadd.f32 %v795_v22, %v1879_v18  ;;  %1561 = vmatmul.mubr.msk.f32.gmra.mxu1 %vm90_vm1, %v923_v17  ;;  %v801_v34 = vsel %vm323_vm4, %v795_v22, -1e+30  ;;  %v804_v18 = vsel %vm326_vm5, %v795_v22, -1e+30  ;;  %v807_v43 = vsel %vm329_vm6, %v795_v22, -1e+30 }
 0x434   :  { %v1373_v33 = vadd.f32 -1.0, %v1615_v27  ;;  %1582 = vmatprep.mubr.msk.f32.mxu1 %vm1653_vm0, %v1652_v1  ;;  %v810_v44 = vsel %vm341_vm7, %v801_v34, -inf  ;;  %v821_v48 = vsel %vm341_vm7, %v804_v18, -inf  ;;  %vm782_vm1 = vcmp.gt.f32.partialorder %v777_v0, 0.0 }
 0x435   :  { %v832_v50 = vsel %vm341_vm7, %v807_v43, -inf  ;;  %v351_v27 = vrot.slane %v350_v8, 1  ;;  %v373_v31 = vrot.slane %v372_v16, 1  ;;  %v363_v43 = vmax.f32 %v361_v9, %v362_v30 }
 0x436   :  { %v796_v35 = vsel %vm781_vm14, %v772_v59, %v1373_v33 }
 0x437   :  { %v1617_v36 = vpop.eup %1616  ;;  %v2063_v38 = vadd.f32 %v796_v35, %v1923_v29  ;;  %v802_v49 = vsel %vm324_vm9, %v796_v35, -1e+30  ;;  %v805_v29 = vsel %vm327_vm10, %v796_v35, -1e+30  ;;  %v808_v54 = vsel %vm330_vm11, %v796_v35, -1e+30 }
 0x438   :  { %v1374_v42 = vadd.f32 -1.0, %v1617_v36  ;;  %v811_v61 = vsel %vm341_vm7, %v802_v49, -inf  ;;  %v822_v62 = vsel %vm341_vm7, %v805_v29, -inf  ;;  %v833_v63 = vsel %vm341_vm7, %v808_v54, -inf  ;;  %v1045_v54 = vld [vmem:[%s2216_s15 + $0x18] sm:$0xff] }
 0x439   :  { %v374_v39 = vmax.f32 %v372_v16, %v373_v31  ;;  %1564 = vmatpush3.msra.mxu0 %v1045_v54 }
 0x43a   :  { %v797_v55 = vsel %vm782_vm1, %v777_v0, %v1374_v42  ;;  %v352_v42 = vmax.f32 %v350_v8, %v351_v27  ;;  %1565 = vmatprep.subr.mxu0 %v1652_v1 }
 0x43b   :  { %v2079_v56 = vadd.f32 %v797_v55, %v1945_v37  ;;  %v803_v45 = vsel %vm325_vm12, %v797_v55, -1e+30  ;;  %v806_v46 = vsel %vm328_vm13, %v797_v55, -1e+30  ;;  %v809_v47 = vsel %vm2241_vm8, %v797_v55, -1e+30 }
 0x43c   :  { %v812_v51 = vsel %vm341_vm7, %v803_v45, -inf  ;;  %v823_v52 = vsel %vm341_vm7, %v806_v46, -inf  ;;  %v834_v53 = vsel %vm341_vm7, %v809_v47, -inf  ;;  %v1044_v55 = vld [vmem:[%s2216_s15 + $0x10] sm:$0xff]  ;;  %v1043_v45 = vld [vmem:[%s2216_s15 + $0x8] sm:$0xff]  ;;  %v1042_v46 = vld [vmem:[%s2216_s15] sm:$0xff] }
 0x43d   :  { %v813_v37 = vmax.f32 %v810_v44, %v812_v51  ;;  %v824_v58 = vmax.f32 %v821_v48, %v823_v52  ;;  %v835_v59 = vmax.f32 %v832_v50, %v834_v53  ;;  %1566 = vmatpush3.msra.mxu0 %v1044_v55  ;;  %v1142_v47 = vld [vmem:[%s2218_s17] sm:$0xff] }
 0x43e   :  { %1567 = vmatprep.subr.mxu0 %v1652_v1  ;;  %1581 = vmatpush3.msra.mxu1 %v1142_v47  ;;  %v1378_v50 = vld [vmem:[%s2215_s14] ss:$0 sm:$0xff] }
 0x43f   :  { %v814_v0 = vmax.f32 %v813_v37, %v811_v61  ;;  %v825_v2 = vmax.f32 %v824_v58, %v822_v62  ;;  %v836_v3 = vmax.f32 %v835_v59, %v833_v63  ;;  %1568 = vmatpush3.msra.mxu0 %v1043_v45 }
 0x440   :  { %1569 = vmatprep.subr.mxu0 %v1652_v1 }
 0x441   :  { %v815_v5 = vrot.slane %v814_v0, 4  ;;  %v826_v6 = vrot.slane %v825_v2, 4  ;;  %v837_v7 = vrot.slane %v836_v3, 4  ;;  %1570 = vmatpush3.msra.mxu0 %v1042_v46 }
 0x443   :  { %v816_v12 = vmax.f32 %v814_v0, %v815_v5  ;;  %v827_v13 = vmax.f32 %v825_v2, %v826_v6  ;;  %v838_v14 = vmax.f32 %v836_v3, %v837_v7 }
 0x445   :  { %v817_v17 = vrot.slane %v816_v12, 2  ;;  %v828_v22 = vrot.slane %v827_v13, 2  ;;  %v839_v26 = vrot.slane %v838_v14, 2 }
 0x447   :  { %v818_v32 = vmax.f32 %v816_v12, %v817_v17  ;;  %v829_v33 = vmax.f32 %v827_v13, %v828_v22  ;;  %v840_v34 = vmax.f32 %v838_v14, %v839_v26  ;;  %v1385_v17 = vld [vmem:[%s2217_s16] ss:$0 sm:$0xff] }
 0x449   :  { %v819_v18 = vrot.slane %v818_v32, 1  ;;  %v830_v35 = vrot.slane %v829_v33, 1  ;;  %v841_v36 = vrot.slane %v840_v34, 1 }
 0x44b   :  { %v820_v40 = vmax.f32 %v818_v32, %v819_v18  ;;  %v831_v44 = vmax.f32 %v829_v33, %v830_v35  ;;  %v842_v48 = vmax.f32 %v840_v34, %v841_v36  ;;  %v1389_v35 = vld [vmem:[%s2219_s18] ss:$0 sm:$0xff] }
 0x44d   :  { %v2094_v49 = vadd.f32 %v820_v40, %v352_v42  ;;  %v2096_v41 = vadd.f32 %v831_v44, %v363_v43  ;;  %v2098_v29 = vadd.f32 %v842_v48, %v374_v39 }
 0x4eb   :  { %v1010_v51 = vpop.f32.mrf.mxu1 }
 0x4ec   :  { %v1011_v52 = vadd.f32 %v1378_v50, %v1010_v51 }
 0x4ed   :  { %v1556_v53 = vpop.f32.mrf.mxu1 }
 0x4ee   :  { %v1027_v57 = vmin.f32 %v1011_v52, 0.0  ;;  %vm1024_vm15 = vcmp.gt.f32.partialorder %v1011_v52, 0.0 }
 0x4ef   :  { %v1015_v37 = vpop.f32.mrf.mxu1 }
 0x4f0   :  { %v1030_v58 = vmul.f32 1.442695, %v1027_v57  ;;  %v1016_v59 = vadd.f32 %v1378_v50, %v1015_v37 }
 0x4f1   :  { %v1559_v60 = vpop.f32.mrf.mxu1 }
 0x4f2   :  { %1618 = vpow2.f32 %v1030_v58  ;;  %v1028_v61 = vmin.f32 %v1016_v59, 0.0  ;;  %vm1025_vm2 = vcmp.gt.f32.partialorder %v1016_v59, 0.0 }
 0x4f3   :  { %v1020_v62 = vpop.f32.mrf.mxu1 }
 0x4f4   :  { %v1032_v63 = vmul.f32 1.442695, %v1028_v61  ;;  %v1021_v0 = vadd.f32 %v1378_v50, %v1020_v62 }
 0x4f5   :  { %v1562_v2 = vpop.f32.mrf.mxu1 }
 0x4f6   :  { %1620 = vpow2.f32 %v1032_v63  ;;  %v1029_v3 = vmin.f32 %v1021_v0, 0.0  ;;  %vm1026_vm14 = vcmp.gt.f32.partialorder %v1021_v0, 0.0 }
 0x4f8   :  { %v1034_v4 = vmul.f32 1.442695, %v1029_v3 }
 0x4fa   :  { %1622 = vpow2.f32 %v1034_v4 }
 0x4ff   :  { %v1619_v5 = vpop.eup %1618 }
 0x500   :  { %v1382_v6 = vadd.f32 -1.0, %v1619_v5 }
 0x502   :  { %v1039_v7 = vsel %vm1024_vm15, %v1011_v52, %v1382_v6 }
 0x503   :  { %v1621_v8 = vpop.eup %1620  ;;  %1572 = vmatmul.mubr.msk.f32.vlgmr.msra.gmra.mxu0 %vm592_vm3, %v1039_v7 }
 0x504   :  { %1574 = vmatprep.mubr.msk.f32.mxu0 %vm1653_vm0, %v1652_v1  ;;  %v1383_v9 = vadd.f32 -1.0, %v1621_v8 }
 0x506   :  { %v1040_v12 = vsel %vm1025_vm2, %v1016_v59, %v1383_v9 }
 0x507   :  { %v1623_v13 = vpop.eup %1622  ;;  %1575 = vmatmul.mubr.msk.f32.gmra.mxu0 %vm592_vm3, %v1040_v12 }
 0x508   :  { %1577 = vmatprep.mubr.msk.f32.mxu0 %vm1653_vm0, %v1652_v1  ;;  %v1384_v14 = vadd.f32 -1.0, %v1623_v13 }
 0x50a   :  { %v1041_v16 = vsel %vm1026_vm14, %v1021_v0, %v1384_v14 }
 0x50b   :  { %1578 = vmatmul.mubr.msk.f32.gmra.mxu0 %vm592_vm3, %v1041_v16 }
 0x5c3   :  { %v1128_v22 = vpop.f32.mrf.mxu0 }
 0x5c4   :  { %v1129_v26 = vadd.f32 %v1385_v17, %v1128_v22 }
 0x5c5   :  { %v1573_v27 = vpop.f32.mrf.mxu0 }
 0x5c6   :  { %1318 = vst.msk [vmem:[%s2222_s21] sm:$0xff] %vm341_vm7, %v1129_v26  ;;  %1583 = vmatmul.mubr.msk.f32.vlgmr.msra.gmra.mxu1 %vm341_vm7, %v1129_v26 }
 0x5c7   :  { %v1133_v30 = vpop.f32.mrf.mxu0  ;;  %1585 = vmatprep.mubr.msk.f32.mxu1 %vm1653_vm0, %v1652_v1 }
 0x5c8   :  { %v1134_v31 = vadd.f32 %v1385_v17, %v1133_v30 }
 0x5c9   :  { %v1576_v32 = vpop.f32.mrf.mxu0 }
 0x5ca   :  { %1319 = vst.msk [vmem:[%s2222_s21 + $0x8] sm:$0xff] %vm341_vm7, %v1134_v31  ;;  %1586 = vmatmul.mubr.msk.f32.gmra.mxu1 %vm341_vm7, %v1134_v31 }
 0x5cb   :  { %v1138_v33 = vpop.f32.mrf.mxu0  ;;  %1588 = vmatprep.mubr.msk.f32.mxu1 %vm1653_vm0, %v1652_v1 }
 0x5cc   :  { %v1139_v34 = vadd.f32 %v1385_v17, %v1138_v33 }
 0x5cd   :  { %v1579_v18 = vpop.f32.mrf.mxu0 }
 0x5ce   :  { %1320 = vst.msk [vmem:[%s2222_s21 + $0x10] sm:$0xff] %vm341_vm7, %v1139_v34  ;;  %1589 = vmatmul.mubr.msk.f32.gmra.mxu1 %vm341_vm7, %v1139_v34 }
 0x686   :  { %v1225_v36 = vpop.f32.mrf.mxu1 }
 0x687   :  { %v1226_v42 = vadd.f32 %v1389_v35, %v1225_v36 }
 0x688   :  { %v1584_v43 = vpop.f32.mrf.mxu1 }
 0x689   :  { %v1242_v39 = vmin.f32 %v1226_v42, 0.0  ;;  %vm1239_vm0 = vcmp.gt.f32.partialorder %v1226_v42, 0.0 }
 0x68a   :  { %v1230_v40 = vpop.f32.mrf.mxu1 }
 0x68b   :  { %v1245_v44 = vmul.f32 1.442695, %v1242_v39  ;;  %v1231_v1 = vadd.f32 %v1389_v35, %v1230_v40 }
 0x68c   :  { %v1587_v48 = vpop.f32.mrf.mxu1 }
 0x68d   :  { %1624 = vpow2.f32 %v1245_v44  ;;  %v1243_v54 = vmin.f32 %v1231_v1, 0.0  ;;  %vm1240_vm3 = vcmp.gt.f32.partialorder %v1231_v1, 0.0 }
 0x68e   :  { %v1235_v55 = vpop.f32.mrf.mxu1 }
 0x68f   :  { %v1247_v45 = vmul.f32 1.442695, %v1243_v54  ;;  %v1236_v46 = vadd.f32 %v1389_v35, %v1235_v55 }
 0x690   :  { %v1590_v47 = vpop.f32.mrf.mxu1 }
 0x691   :  { %1626 = vpow2.f32 %v1247_v45  ;;  %v1244_v50 = vmin.f32 %v1236_v46, 0.0 }
 0x693   :  { %v1249_v51 = vmul.f32 1.442695, %v1244_v50 }
 0x695   :  { %1628 = vpow2.f32 %v1249_v51 }
 0x69a   :  { %v1625_v52 = vpop.eup %1624 }
 0x69b   :  { %v1393_v53 = vadd.f32 -1.0, %v1625_v52 }
 0x69d   :  { %v1254_v57 = vsel %vm1239_vm0, %v1226_v42, %v1393_v53 }
 0x69e   :  { %v1627_v37 = vpop.eup %1626  ;;  %v1257_v58 = vadd.f32 %v1254_v57, %v2050_v28  ;;  %v1260_v60 = vsel %vm323_vm4, %v1254_v57, -1e+30  ;;  %v1263_v61 = vsel %vm326_vm5, %v1254_v57, -1e+30  ;;  %v1266_v28 = vsel %vm329_vm6, %v1254_v57, -1e+30  ;;  %vm2242_vm5 = vmmov %vm2241_vm8 }
 0x69f   :  { %v1394_v59 = vadd.f32 -1.0, %v1627_v37  ;;  %v1269_v3 = vsel %vm341_vm7, %v1260_v60, -inf  ;;  %v1280_v4 = vsel %vm341_vm7, %v1263_v61, -inf  ;;  %vm1241_vm4 = vcmp.gt.f32.partialorder %v1236_v46, 0.0 }
 0x6a0   :  { %1315 = vst.msk [vmem:[%s2221_s20] sm:$0xff] %vm341_vm7, %v1257_v58  ;;  %v1291_v19 = vsel %vm341_vm7, %v1266_v28, -inf  ;;  %vm1308_vm6 = vcmask 1041409  }
 0x6a1   :  { %v1255_v62 = vsel %vm1240_vm3, %v1231_v1, %v1394_v59 }
 0x6a2   :  { %v1629_v63 = vpop.eup %1628  ;;  %v1258_v0 = vadd.f32 %v1255_v62, %v2063_v38  ;;  %v1261_v10 = vsel %vm324_vm9, %v1255_v62, -1e+30  ;;  %v1264_v11 = vsel %vm327_vm10, %v1255_v62, -1e+30  ;;  %v1267_v15 = vsel %vm330_vm11, %v1255_v62, -1e+30 }
 0x6a3   :  { %v1395_v2 = vadd.f32 -1.0, %v1629_v63  ;;  %v1270_v23 = vsel %vm341_vm7, %v1261_v10, -inf  ;;  %v1281_v24 = vsel %vm341_vm7, %v1264_v11, -inf  ;;  %v1292_v25 = vsel %vm341_vm7, %v1267_v15, -inf }
 0x6a4   :  { %1316 = vst.msk [vmem:[%s2221_s20 + $0x8] sm:$0xff] %vm341_vm7, %v1258_v0  ;;  %vm1313_vm9 = vcmask 59392  }
 0x6a5   :  { %v1256_v38 = vsel %vm1241_vm4, %v1236_v46, %v1395_v2 }
 0x6a6   :  { %v1259_v5 = vadd.f32 %v1256_v38, %v2079_v56  ;;  %v1262_v6 = vsel %vm325_vm12, %v1256_v38, -1e+30  ;;  %v1265_v7 = vsel %vm328_vm13, %v1256_v38, -1e+30  ;;  %v1268_v8 = vsel %vm2242_vm5, %v1256_v38, -1e+30 }
 0x6a7   :  { %v1271_v20 = vsel %vm341_vm7, %v1262_v6, -inf  ;;  %v1282_v9 = vsel %vm341_vm7, %v1265_v7, -inf  ;;  %v1293_v21 = vsel %vm341_vm7, %v1268_v8, -inf }
 0x6a8   :  { %v1272_v12 = vmax.f32 %v1269_v3, %v1271_v20  ;;  %v1283_v13 = vmax.f32 %v1280_v4, %v1282_v9  ;;  %v1294_v56 = vmax.f32 %v1291_v19, %v1293_v21  ;;  %1317 = vst.msk [vmem:[%s2221_s20 + $0x10] sm:$0xff] %vm341_vm7, %v1259_v5  ;;  %s1654_s20 = smov [#allocation2]   ;;  %vm1310_vm7 = vcmask 1042434  }
 0x6a9   :  { %s1327_s27 = sshll.u32 %s1654_s20, 4  ;;  %s1328_s27 = int_to_ptr.vmem [resolvable:$true] %s1327_s27 }
 0x6aa   :  { %v1273_v14 = vmax.f32 %v1272_v12, %v1270_v23  ;;  %v1284_v16 = vmax.f32 %v1283_v13, %v1281_v24  ;;  %v1295_v17 = vmax.f32 %v1294_v56, %v1292_v25  ;;  %s1630_s12 = scalar_lea.vmem %s1328_s27, 64  ;;  %p1635_p1 = scmp.lt.s32.totalorder %s1328_s27, %s1328_s27 }
 0x6ab   :  { %p1631_p0 = scmp.ne.s32.totalorder %s1328_s27, %s1630_s12  ;;  %p1636_p2 = scmp.lt.s32.totalorder %s1630_s12, %s1630_s12 }
 0x6ac   :  { %v1274_v22 = vrot.slane %v1273_v14, 4  ;;  %v1285_v26 = vrot.slane %v1284_v16, 4  ;;  %v1296_v27 = vrot.slane %v1295_v17, 4 }
 0x6ad   :  { %p1637_p3 = por %p1636_p2, %p1635_p1 }
 0x6ae   :  { %v1275_v30 = vmax.f32 %v1273_v14, %v1274_v22  ;;  %v1286_v31 = vmax.f32 %v1284_v16, %v1285_v26  ;;  %v1297_v32 = vmax.f32 %v1295_v17, %v1296_v27 }
 0x6af   :  { %p1638_p4 = pnand %p1637_p3, %p1631_p0 }
 0x6b0   :  { %v1276_v33 = vrot.slane %v1275_v30, 2  ;;  %v1287_v34 = vrot.slane %v1286_v31, 2  ;;  %v1298_v18 = vrot.slane %v1297_v32, 2 }
 0x6b2   :  { %v1277_v35 = vmax.f32 %v1275_v30, %v1276_v33  ;;  %v1288_v36 = vmax.f32 %v1286_v31, %v1287_v34  ;;  %v1299_v42 = vmax.f32 %v1297_v32, %v1298_v18 }
 0x6b4   :  { %v1278_v43 = vrot.slane %v1277_v35, 1  ;;  %v1289_v39 = vrot.slane %v1288_v36, 1  ;;  %v1300_v40 = vrot.slane %v1299_v42, 1 }
 0x6b6   :  { %v1279_v44 = vmax.f32 %v1277_v35, %v1278_v43  ;;  %v1290_v1 = vmax.f32 %v1288_v36, %v1289_v39  ;;  %v1301_v48 = vmax.f32 %v1299_v42, %v1300_v40 }
 0x6b8   :  { %v1302_v54 = vadd.f32 %v1279_v44, %v2094_v49  ;;  %v1303_v55 = vadd.f32 %v1290_v1, %v2096_v41  ;;  %v1304_v45 = vadd.f32 %v1301_v48, %v2098_v29 }
 0x6ba   :  { %v1309_v46 = vsel %vm1308_vm6, %v1303_v55, %v1302_v54 }
 0x6bb   :  { %v1311_v47 = vsel %vm1310_vm7, %v1304_v45, %v1309_v46 }
 0x6bc   :  { %1314 = vst.msk [vmem:[#allocation2] sm:$0x7] %vm1313_vm9, %v1311_v47 }
 0x6bd   :  { %1641 = shalt.err (!%p1638_p4)
}
 0x6be   :  { %1330 = dma.vmem_to_hbm [thread:$0]  %s1328_s27, 64, %s2220_s19, [#allocation3]  }
 0x6bf   :  { %1650 = dma.done.wait [#allocation3], 64  }
 0x6c0   :  { %1651 = vsyncadd [#allocation3], 4294967232 }
 0x6c1   :  { %1342 = vsyncpa [#allocation3], 1 }

</bundles_post_ra>
